<compile_context>
chip_gen: v7x
topology: tpu7x:2x2x1
jax: 0.10.0
libtpu: 0.0.40
codegen_flags: <defaults>
</compile_context>

<pallas_src>
import jax
import jax.numpy as jnp
from jax.experimental import pallas as pl
from jax.experimental.pallas import tpu as pltpu

_EPS = 1e-5


# ----------------------------------------------------------------------------
# Kernels
# ----------------------------------------------------------------------------
def _revin_fused_kernel(x_ref, out_ref, stats_ref):
    """Full-T tile: stats + normalize in one pass. x/out: (bt, T, tc)."""
    x = x_ref[...].astype(jnp.float32)
    mean = jnp.mean(x, axis=1, keepdims=True)                    # (bt, 1, tc)
    # Recompute (x - mean) per use (reduce + normalize) instead of binding a
    # tile-sized intermediate -> each use fuses into its consumer, no spill.
    var = jnp.mean(jnp.square(x - mean), axis=1, keepdims=True)  # unbiased=False
    stdev = jnp.sqrt(var + _EPS)
    inv = jax.lax.rsqrt(var + _EPS)                              # EUP, hoisted
    out_ref[...] = ((x - mean) * inv).astype(out_ref.dtype)
    # Single (bt, 2, tc) store instead of two sublane-masked stores.
    stats_ref[...] = jnp.concatenate([mean, stdev], axis=1).astype(stats_ref.dtype)


def _make_revin_stats_kernel(t_total):
    inv_n = 1.0 / float(t_total)

    def kernel(x_ref, stats_ref, sum_ref, sumsq_ref):
        t = pl.program_id(2)

        @pl.when(t == 0)
        def _():
            sum_ref[...] = jnp.zeros_like(sum_ref)
            sumsq_ref[...] = jnp.zeros_like(sumsq_ref)

        x = x_ref[...].astype(jnp.float32)                       # (bt, tt, tc)
        sum_ref[...] += jnp.sum(x, axis=1, keepdims=True)
        sumsq_ref[...] += jnp.sum(x * x, axis=1, keepdims=True)

        @pl.when(t == pl.num_programs(2) - 1)
        def _():
            mean = sum_ref[...] * inv_n
            # f32 accumulators; clamp guards tiny negative from cancellation.
            var = jnp.maximum(sumsq_ref[...] * inv_n - mean * mean, 0.0)
            stats_ref[...] = jnp.concatenate(
                [mean, jnp.sqrt(var + _EPS)], axis=1
            ).astype(stats_ref.dtype)

    return kernel


def _revin_norm_kernel(stats_ref, x_ref, out_ref):
    stats = stats_ref[...].astype(jnp.float32)                   # (bt, 2, tc)
    mean = stats[:, 0:1, :]
    inv = 1.0 / stats[:, 1:2, :]                                 # exact divide, once per channel
    out_ref[...] = ((x_ref[...].astype(jnp.float32) - mean) * inv).astype(out_ref.dtype)


# ----------------------------------------------------------------------------
# Tiling helpers
# ----------------------------------------------------------------------------
def _round_up(n, m):
    return ((n + m - 1) // m) * m


def _maybe_pad_channels(C, pad_channels):
    """Return (C_pad, padded?). Pad only when lane-density gain beats inflation."""
    if C % 128 == 0:
        return C, False
    C_pad = _round_up(C, 128)
    if pad_channels is True:
        return C_pad, True
    if pad_channels == "auto" and C_pad <= int(C * 1.25):
        return C_pad, True
    return C, False


def _choose_tiles_full_T(B, T, C, itemsize, target_bytes, min_grid_steps=8):
    """(bt, tc) for the fused path: lane-dense tc, packed bt, multi-step grid."""
    if C % 128 == 0:
        tc = 128
        while (C % (tc * 2) == 0) and (T * tc * 2 * itemsize <= target_bytes):
            tc *= 2
    else:
        tc = C  # small / unpadded channel count: accept masked stores
    bt = 1
    while (B % (bt * 2) == 0) and (bt * 2 * T * tc * itemsize <= target_bytes):
        bt *= 2

    def steps(bt_, tc_):
        return pl.cdiv(B, bt_) * pl.cdiv(C, tc_)

    # Keep the grid multi-step so megacore sharding (v7x: 2 TCs) and software
    # pipelining stay engaged.
    while steps(bt, tc) < min_grid_steps and bt > 1:
        bt //= 2
    while steps(bt, tc) < min_grid_steps and C % 128 == 0 and tc > 128:
        tc //= 2
    return bt, tc


def _choose_t_tile(T, tc, itemsize, target_bytes):
    """Largest divisor of T that is a multiple of 8 (or == T) and fits budget."""
    divisors = [d for d in range(1, T + 1) if T % d == 0]
    valid = [d for d in divisors if (d % 8 == 0) or (d == T)]
    fitting = [d for d in valid if d * tc * itemsize <= target_bytes]
    if fitting:
        return max(fitting)
    # TODO(synk): masked partial T tiles when T has no divisor that is a
    # multiple of 8; until then fall back to the smallest valid (still correct).
    return min(valid)


def _vmem_limit(tile_bytes_total):
    # 2x for double buffering + 50% / 4 MiB headroom for compiler scratch,
    # clamped so we never over-request on v7x's 64 MiB physical VMEM.
    limit = int(2 * tile_bytes_total * 1.5) + (4 << 20)
    return max(16 << 20, min(limit, 56 << 20))


# ----------------------------------------------------------------------------
# Wrapper
# ----------------------------------------------------------------------------
def revin_forward(x, *, target_tile_bytes=4 << 20, pad_channels="auto"):
    """RevIN forward. x: (B, T, C). Returns (x_normalized, means, stdev)."""
    B, T, C = x.shape
    itemsize = jnp.dtype(x.dtype).itemsize

    C_pad, padded = _maybe_pad_channels(C, pad_channels)
    x_in = jnp.pad(x, ((0, 0), (0, 0), (0, C_pad - C))) if padded else x

    min_tc = 128 if C_pad % 128 == 0 else C_pad
    full_T_fits = T * min_tc * itemsize <= target_tile_bytes

    if full_T_fits:
        # ---------------- Path A: fused single-pass kernel ----------------
        bt, tc = _choose_tiles_full_T(B, T, C_pad, itemsize, target_tile_bytes)
        grid = (pl.cdiv(B, bt), pl.cdiv(C_pad, tc))
        in_tile = bt * T * tc * itemsize
        out_tile = bt * T * tc * itemsize
        stats_tile = bt * 2 * tc * 4

        x_norm, stats = pl.pallas_call(
            _revin_fused_kernel,
            out_shape=(
                jax.ShapeDtypeStruct((B, T, C_pad), x.dtype),
                jax.ShapeDtypeStruct((B, 2, C_pad), jnp.float32),
            ),
            grid_spec=pltpu.PrefetchScalarGridSpec(
                num_scalar_prefetch=0,
                grid=grid,
                in_specs=[pl.BlockSpec((bt, T, tc), lambda b, c: (b, 0, c))],
                out_specs=(
                    pl.BlockSpec((bt, T, tc), lambda b, c: (b, 0, c)),
                    pl.BlockSpec((bt, 2, tc), lambda b, c: (b, 0, c)),
                ),
            ),
            compiler_params=pltpu.CompilerParams(
                dimension_semantics=("parallel", "parallel"),
                vmem_limit_bytes=_vmem_limit(in_tile + out_tile + stats_tile),
            ),
        )(x_in)
    else:
        # -------- Path B: T-tiled two-pass path (long sequences) ----------
        bt = 1
        tc = min_tc
        tt = _choose_t_tile(T, tc, itemsize, target_tile_bytes)
        grid = (pl.cdiv(B, bt), pl.cdiv(C_pad, tc), pl.cdiv(T, tt))
        x_tile = bt * tt * tc * itemsize
        stats_tile = bt * 2 * tc * 4
        acc_tile = 2 * bt * 1 * tc * 4

        stats = pl.pallas_call(
            _make_revin_stats_kernel(T),
            out_shape=jax.ShapeDtypeStruct((B, 2, C_pad), jnp.float32),
            grid_spec=pltpu.PrefetchScalarGridSpec(
                num_scalar_prefetch=0,
                grid=grid,
                in_specs=[pl.BlockSpec((bt, tt, tc), lambda b, c, t: (b, t, c))],
                out_specs=pl.BlockSpec((bt, 2, tc), lambda b, c, t: (b, 0, c)),
                scratch_shapes=[
                    pltpu.VMEM((bt, 1, tc), jnp.float32),
                    pltpu.VMEM((bt, 1, tc), jnp.float32),
                ],
            ),
            compiler_params=pltpu.CompilerParams(
                dimension_semantics=("parallel", "parallel", "arbitrary"),
                vmem_limit_bytes=_vmem_limit(x_tile + stats_tile + acc_tile),
            ),
        )(x_in)

        x_norm = pl.pallas_call(
            _revin_norm_kernel,
            out_shape=jax.ShapeDtypeStruct((B, T, C_pad), x.dtype),
            grid_spec=pltpu.PrefetchScalarGridSpec(
                num_scalar_prefetch=0,
                grid=grid,
                in_specs=[
                    pl.BlockSpec((bt, 2, tc), lambda b, c, t: (b, 0, c)),
                    pl.BlockSpec((bt, tt, tc), lambda b, c, t: (b, t, c)),
                ],
                out_specs=pl.BlockSpec((bt, tt, tc), lambda b, c, t: (b, t, c)),
            ),
            compiler_params=pltpu.CompilerParams(
                dimension_semantics=("parallel", "parallel", "parallel"),
                vmem_limit_bytes=_vmem_limit(2 * x_tile + stats_tile),
            ),
        )(stats, x_in)

    if padded:
        x_norm = x_norm[:, :, :C]
        stats = stats[:, :, :C]
    means = stats[:, 0:1, :]
    stdev = stats[:, 1:2, :]
    return x_norm, means, stdev


def revin_forward_ref(x):
    """Pure-JAX reference matching the PyTorch forward exactly."""
    means = jnp.mean(x, axis=1, keepdims=True)
    var = jnp.mean((x - means) ** 2, axis=1, keepdims=True)  # unbiased=False
    stdev = jnp.sqrt(var + _EPS)
    return (x - means) / stdev, means, stdev


if __name__ == "__main__":
    key = jax.random.PRNGKey(0)
    k_a, k_b = jax.random.split(key)

    # --- Path A (fused, full-T tiles): batch=2, seq(time)=8, channels=16. ---
    # (RevIN's __init__ args `channel`/`output_dim` carry no forward weights.)
    B, T, C = 2, 8, 16
    x = jax.random.normal(k_a, (B, T, C), dtype=jnp.float32) * 3.0 + 1.5
    x_norm, means, stdev = revin_forward(x)
    jax.block_until_ready((x_norm, means, stdev))
    x_norm_ref, means_ref, stdev_ref = revin_forward_ref(x)
    assert x_norm.shape == (B, T, C) and means.shape == (B, 1, C) and stdev.shape == (B, 1, C)
    assert jnp.allclose(x_norm, x_norm_ref, atol=1e-5, rtol=1e-5)
    assert jnp.allclose(means, means_ref, atol=1e-5, rtol=1e-5)
    assert jnp.allclose(stdev, stdev_ref, atol=1e-5, rtol=1e-5)

    # --- Path B (T-tiled two-pass), forced via a tiny tile budget so the
    # long-sequence fallback is exercised at small shapes. ---
    B2, T2, C2 = 2, 64, 128
    x2 = jax.random.normal(k_b, (B2, T2, C2), dtype=jnp.float32) * 2.0 - 0.5
    xb, mb, sb = revin_forward(x2, target_tile_bytes=16 * 1024)
    jax.block_until_ready((xb, mb, sb))
    xbr, mbr, sbr = revin_forward_ref(x2)
    assert jnp.allclose(xb, xbr, atol=1e-4, rtol=1e-4)
    assert jnp.allclose(mb, mbr, atol=1e-4, rtol=1e-4)
    assert jnp.allclose(sb, sbr, atol=1e-4, rtol=1e-4)

    print("KERNEL_OK")
</pallas_src>

<mosaic_0001>
module attributes {stable_mosaic.version = 11 : i64} {
  func.func @_revin_fused_kernel(%arg0: i32, %arg1: i32, %arg2: memref<1x8x16xf32, #tpu.memory_space<vmem>>, %arg3: memref<1x8x16xf32, #tpu.memory_space<vmem>>, %arg4: memref<1x2x16xf32, #tpu.memory_space<vmem>>) attributes {dimension_semantics = [#tpu.dimension_semantics<parallel>, #tpu.dimension_semantics<parallel>], iteration_bounds = array<i64: 2, 1>, scalar_prefetch = 0 : i64, scratch_operands = 0 : i64, tpu.core_type = #tpu.core_type<tc>, window_params = [{transform_indices = @transform_0, window_bounds = array<i64: 1, 8, 16>}, {transform_indices = @transform_1, window_bounds = array<i64: 1, 8, 16>}, {transform_indices = @transform_2, window_bounds = array<i64: 1, 2, 16>}]} {
    %c0 = arith.constant 0 : index
    %c0_0 = arith.constant 0 : index
    %c0_1 = arith.constant 0 : index
    %0 = vector.load %arg2[%c0, %c0_0, %c0_1] : memref<1x8x16xf32, #tpu.memory_space<vmem>>, vector<1x8x16xf32>
    %cst = arith.constant dense<0.000000e+00> : vector<1x16xf32>
    %1 = vector.multi_reduction <add>, %0, %cst [1] : vector<1x8x16xf32> to vector<1x16xf32>
    %2 = vector.shape_cast %1 : vector<1x16xf32> to vector<1x1x16xf32>
    %cst_2 = arith.constant 8.000000e+00 : f32
    %3 = vector.broadcast %cst_2 : f32 to vector<1x1x16xf32>
    %4 = arith.divf %2, %3 : vector<1x1x16xf32>
    %5 = vector.broadcast %4 : vector<1x1x16xf32> to vector<1x8x16xf32>
    %6 = arith.subf %0, %5 : vector<1x8x16xf32>
    %7 = arith.mulf %6, %6 : vector<1x8x16xf32>
    %cst_3 = arith.constant dense<0.000000e+00> : vector<1x16xf32>
    %8 = vector.multi_reduction <add>, %7, %cst_3 [1] : vector<1x8x16xf32> to vector<1x16xf32>
    %9 = vector.shape_cast %8 : vector<1x16xf32> to vector<1x1x16xf32>
    %cst_4 = arith.constant 8.000000e+00 : f32
    %10 = vector.broadcast %cst_4 : f32 to vector<1x1x16xf32>
    %11 = arith.divf %9, %10 : vector<1x1x16xf32>
    %cst_5 = arith.constant 9.99999974E-6 : f32
    %12 = vector.broadcast %cst_5 : f32 to vector<1x1x16xf32>
    %13 = arith.addf %11, %12 : vector<1x1x16xf32>
    %14 = math.sqrt %13 : vector<1x1x16xf32>
    %cst_6 = arith.constant 9.99999974E-6 : f32
    %15 = vector.broadcast %cst_6 : f32 to vector<1x1x16xf32>
    %16 = arith.addf %11, %15 : vector<1x1x16xf32>
    %17 = math.rsqrt %16 : vector<1x1x16xf32>
    %18 = vector.broadcast %4 : vector<1x1x16xf32> to vector<1x8x16xf32>
    %19 = arith.subf %0, %18 : vector<1x8x16xf32>
    %20 = vector.broadcast %17 : vector<1x1x16xf32> to vector<1x8x16xf32>
    %21 = arith.mulf %19, %20 : vector<1x8x16xf32>
    %c0_7 = arith.constant 0 : index
    %c0_8 = arith.constant 0 : index
    %c0_9 = arith.constant 0 : index
    %22 = vector.load %arg3[%c0_7, %c0_8, %c0_9] : memref<1x8x16xf32, #tpu.memory_space<vmem>>, vector<1x8x16xf32>
    tpu.vector_store %arg3[%c0_7, %c0_8, %c0_9], %21 {strides = array<i32>} : memref<1x8x16xf32, #tpu.memory_space<vmem>>, vector<1x8x16xf32>,
    %23 = tpu.concatenate %4, %14 in 1 : vector<1x1x16xf32>, vector<1x1x16xf32> -> vector<1x2x16xf32>
    %c0_10 = arith.constant 0 : index
    %c0_11 = arith.constant 0 : index
    %c0_12 = arith.constant 0 : index
    %24 = vector.load %arg4[%c0_10, %c0_11, %c0_12] : memref<1x2x16xf32, #tpu.memory_space<vmem>>, vector<1x2x16xf32>
    tpu.vector_store %arg4[%c0_10, %c0_11, %c0_12], %23 {strides = array<i32>} : memref<1x2x16xf32, #tpu.memory_space<vmem>>, vector<1x2x16xf32>,
    return
  }
  func.func @transform_0(%arg0: i32, %arg1: i32) -> (i32, i32, i32) {
    %c0_i32 = arith.constant 0 : i32
    %c0_i32_0 = arith.constant 0 : i32
    return %arg0, %c0_i32, %arg1 : i32, i32, i32
  }
  func.func @transform_1(%arg0: i32, %arg1: i32) -> (i32, i32, i32) {
    %c0_i32 = arith.constant 0 : i32
    %c0_i32_0 = arith.constant 0 : i32
    return %arg0, %c0_i32, %arg1 : i32, i32, i32
  }
  func.func @transform_2(%arg0: i32, %arg1: i32) -> (i32, i32, i32) {
    %c0_i32 = arith.constant 0 : i32
    %c0_i32_0 = arith.constant 0 : i32
    return %arg0, %c0_i32, %arg1 : i32, i32, i32
  }
}

</mosaic_0001>

<bundles_post_ra>
// kernel: tpu_custom_call.1
= control target key start
LH: loop header
LB: loop body
LE: loop exit
PB: predicated region body
PF: predicated region fallthrough
CT: control target
= control target key end

     0   :  { %8 = vsyncpa [#allocation3], 0  ;;  %s837_s0 = inlined_call_operand.hbm [shape: f32[2,8,16], index: 0, kind: input, shape index: {}]   ;;  %s838_s1 = inlined_call_operand.hbm [shape: f32[2,8,16], index: 1, kind: output, shape index: {0}]   ;;  %s839_s2 = inlined_call_operand.hbm [shape: f32[2,2,16], index: 2, kind: output, shape index: {1}]  }
   0x1   :  { %10 = vsyncpa [#allocation3 + $0x1], 0 }
   0x2   :  { %11 = vsyncpa [#allocation4], 0 }
   0x3   :  { %13 = vsyncpa [#allocation4 + $0x1], 0 }
   0x4   :  { %14 = vsyncpa [#allocation7], 0 }
   0x5   :  { %16 = vsyncpa [#allocation7 + $0x1], 0  ;;  %s621_s9 = smov 0   ;;  %s623_s10 = smov 0  }
   0x6   :  { %s625_s11 = smov 0   ;;  %s627_s12 = smov 0  }
   0x7   :  { %s629_s13 = smov 0   ;;  %s631_s14 = smov 0  }
   0x8 LB: > { %s372_s15 = sadd.s32 4294967295, %s601_s14   ;;  %s373_s16 = sadd.s32 4294967294, %s601_s14   ;;  %s601_s14 = sphi %s631_s14, %s22_s14   ;;  %s597_s13 = sphi %s629_s13, %s855_s13   ;;  %s593_s12 = sphi %s627_s12, %s854_s12   ;;  %s589_s11 = sphi %s625_s11, %s853_s11   ;;  %s585_s10 = sphi %s623_s10, %s852_s10   ;;  %s581_s9 = sphi %s621_s9, %s851_s9  }
   0x9   : > { %s34_s17 = sadd.s32 1, %s597_s13  ;;  %s43_s18 = sadd.s32 1, %s589_s11 }
   0xa   : > { %p36_p0 = scmp.ge.s32.totalorder %s34_s17, 2  ;;  %p50_p1 = scmp.ne.s32.totalorder %s589_s11, %s585_s10 }
   0xb   : > { %p51_p2 = scmp.eq.s32.totalorder %s601_s14, 0  ;;  %p56_p3 = scmp.ne.s32.totalorder %s585_s10, %s581_s9 }
   0xc   : > { %s857_s17 = smov (%p36_p0, %s34_s17), 0  ;;  %p57_p5 = scmp.eq.s32.totalorder %s372_s15, 0 }
   0xd   : > { %p662_p4 = por %p51_p2, %p50_p1  ;;  %s38_s20 = ssub.s32 %s597_s13, %s857_s17 }
   0xe   : > { %p82_p6 = scmp.eq.s32.totalorder %s372_s15, 1  ;;  %p41_p7 = scmp.eq.s32.totalorder %s38_s20, 0 }
   0xf   : > { %p668_p8 = por %p57_p5, %p56_p3  ;;  %p88_p10 = scmp.eq.s32.totalorder %s373_s16, 1 }
  0x10   : > { %p672_p9 = por %p82_p6, %p50_p1  ;;  %p405_p13 = scmp.lt.s32.totalorder %s601_s14, 2 }
  0x11   : > { %s677_s23 = scalar_select %p41_p7, %s589_s11, %s43_s18  }
  0x12   : > { %s843_s22 = scalar_select %p672_p9, 1, 0 }
  0x13   : > { %p679_p11 = por %p88_p10, %p56_p3  ;;  %s136_s25 = sand.u32 1, %s589_s11  }
  0x14   : > { %s376_s26 = sshll.u32 %s136_s25, 3  ;;  %s377_s27 = sshll.u32 %s597_s13, 7 }
  0x15   : > { %s844_s24 = scalar_select %p679_p11, 1, 0 }
  0x16   : > { %s690_s30 = scalar_lea.hbm %s837_s0, %s377_s27  ;;  %s140_s3 = scalar_lea.vmem [#allocation2], %s376_s26 }
  0x17   : > { %s148_s4 = sshll.u32 %s140_s3, 4  ;;  %p696_p0 = pnand %p405_p13, %p662_p4  ;;  %s692_s4 = int_to_ptr.vmem [resolvable:$true] %s148_s4 }
  0x18   : > { %s137_s6 = scalar_lea.sflag [#allocation3], %s136_s25  ;;  %s457_s7 = scalar_lea.hbm %s690_s30, 128 }
  0x19   : > { %p458_p3 = scmp.ne.s32.totalorder %s690_s30, %s457_s7  ;;  %p459_p5 = pneg %p696_p0 }
  0x1a   : > { %s462_s16 = scalar_lea.hbm %s837_s0, 256  ;;  %p463_p4 = scmp.lt.u32.totalorder %s690_s30, %s837_s0 }
  0x1b   : > { %p460_p6 = pnand %p459_p5, %p458_p3  ;;  %p464_p10 = scmp.lt.u32.totalorder %s462_s16, %s457_s7 }
  0x1c   : > { %p466_p12 = scmp.lt.u32.totalorder %s457_s7, %s690_s30 }
  0x1d   : > { %p461_p7 = pneg %p460_p6  ;;  %p465_p13 = por %p464_p10, %p463_p4 }
  0x1f   : > { %p467_p1 = por %p466_p12, %p465_p13 }
  0x21   : > { %p468_p2 = pnand %p467_p1, %p461_p7 }
  0x23   : > { %471 = shalt.err (!%p468_p2)
}
  0x24   : > { %s472_s20 = scalar_lea.vmem %s692_s4, 128  ;;  %s603_s25 = smov [#allocation2]  }
  0x25   : > { %p473_p3 = scmp.ne.s32.totalorder %s692_s4, %s472_s20  ;;  %s477_s26 = sshll.u32 %s603_s25, 4  ;;  %s478_s26 = int_to_ptr.vmem [resolvable:$false] %s477_s26 }
  0x26   : > { %s479_s27 = scalar_lea.vmem %s478_s26, 256  ;;  %p480_p9 = scmp.lt.s32.totalorder %s692_s4, %s478_s26 }
  0x27   : > { %p475_p6 = pnand %p473_p3, %p459_p5  ;;  %p481_p4 = scmp.lt.s32.totalorder %s479_s27, %s472_s20 }
  0x29   : > { %p476_p11 = pneg %p475_p6  ;;  %p482_p10 = por %p481_p4, %p480_p9 }
  0x2b   : > { %p483_p12 = pnand %p482_p10, %p476_p11 }
  0x2d   : > { %486 = shalt.err (!%p483_p12)
}
  0x2e   : > { %397 = dma.hbm_to_vmem [thread:$0]  (!%p696_p0), %s690_s30, 128, %s692_s4, %s137_s6  }
  0x2f   : > { %p846_p1 = scmp.lt.s32.totalorder %s601_s14, 3  ;;  %p847_p2 = scmp.ge.s32.totalorder %s601_s14, 1 }
  0x31   : > { %p154_p5 = pnand %p847_p2, %p846_p1 }
  0x32   : > { %s732_s28 = sand.u32 (!%p154_p5), 1, %s585_s10  }
  0x33   : > { %157 = sbr.rel (%p154_p5) target bundleno = 147 (0x93), region = 24  ;;  %s379_s29 = sshll.u32 (!%p154_p5), %s732_s28, 3 }
  0x34   : > { %s160_s3 = scalar_lea.sflag (!%p154_p5), [#allocation3], %s732_s28  ;;  %s163_s7 = scalar_lea.vmem (!%p154_p5), [#allocation2], %s379_s29 }
  0x3a   : > { %568 = dma.done.wait (%p668_p8), %s160_s3, 128  }
  0x3b   : > { %570 = vsyncadd (%p668_p8), %s160_s3, 4294967168  ;;  %vm190_vm0 = vcmask 130048   ;;  %v189_v0 = vld [vmem:[%s163_s7] sm:$0xff]  ;;  %s381_s21 = sshll.u32 %s732_s28, 1  ;;  %s181_s30 = scalar_lea.vmem [#allocation5], %s379_s29  ;;  %vm221_vm3 = vcmask 1040384  }
  0x3c   : > { %v191_v1 = vsel %vm190_vm0, %v189_v0, 0.0  ;;  %s245_s4 = sshll.u32 %s181_s30, 4  ;;  %s384_s5 = sshll.u32 %s593_s12, 7  ;;  %vm223_vm4 = vcmask 123904   ;;  %s750_s4 = int_to_ptr.vmem [resolvable:$true] %s245_s4 }
  0x3d   : > { %v192_v2 = vrot.slane %v191_v1, 4  ;;  %s747_s6 = scalar_lea.vmem [#allocation6], %s381_s21  ;;  %s385_s15 = sshll.u32 %s593_s12, 5 }
  0x3e   : > { %s259_s8 = sshll.u32 %s747_s6, 4  ;;  %s756_s19 = scalar_lea.hbm %s838_s1, %s384_s5  ;;  %s758_s8 = int_to_ptr.vmem [resolvable:$true] %s259_s8 }
  0x3f   : > { %v193_v3 = vadd.f32 %v192_v2, %v191_v1  ;;  %s764_s12 = scalar_lea.hbm %s839_s2, %s385_s15  ;;  %s226_s26 = scalar_lea.sflag [#allocation4], %s732_s28 }
  0x40   : > { %s487_s27 = scalar_lea.vmem %s750_s4, 128  ;;  %p848_p9 = scmp.ne.s32.totalorder %s843_s22, 0 }
  0x41   : > { %v194_v4 = vrot.slane %v193_v3, 2  ;;  %p488_p8 = scmp.ne.s32.totalorder %s750_s4, %s487_s27  ;;  %s604_s29 = smov [#allocation5]  }
  0x42   : > { %s491_s3 = sshll.u32 %s604_s29, 4  ;;  %s492_s3 = int_to_ptr.vmem [resolvable:$false] %s491_s3 }
  0x43   : > { %v195_v5 = vadd.f32 %v194_v4, %v193_v3  ;;  %p489_p11 = pnand %p488_p8, %p848_p9  ;;  %s493_s7 = scalar_lea.vmem %s492_s3, 256 }
  0x44   : > { %p494_p7 = scmp.lt.s32.totalorder %s750_s4, %s492_s3  ;;  %p495_p13 = scmp.lt.s32.totalorder %s493_s7, %s487_s27 }
  0x45   : > { %v196_v6 = vrot.slane %v195_v5, 1  ;;  %p490_p0 = pneg %p489_p11 }
  0x46   : > { %p496_p3 = por %p495_p13, %p494_p7 }
  0x47   : > { %v197_v7 = vadd.f32 %v196_v6, %v195_v5 }
  0x48   : > { %p497_p6 = pnand %p496_p3, %p490_p0 }
  0x49   : > { %v741_v8 = vmul.f32 0.125, %v197_v7 }
  0x4b   : > { %v200_v9 = vsub.f32 %v189_v0, %v741_v8 }
  0x4d   : > { %v201_v10 = vmul.f32 %v200_v9, %v200_v9 }
  0x4f   : > { %v202_v11 = vsel %vm190_vm0, %v201_v10, 0.0 }
  0x50   : > { %v203_v12 = vrot.slane %v202_v11, 4 }
  0x52   : > { %v204_v13 = vadd.f32 %v203_v12, %v202_v11 }
  0x54   : > { %v205_v14 = vrot.slane %v204_v13, 2 }
  0x56   : > { %v206_v15 = vadd.f32 %v205_v14, %v204_v13 }
  0x58   : > { %v207_v16 = vrot.slane %v206_v15, 1 }
  0x5a   : > { %v208_v17 = vadd.f32 %v207_v16, %v206_v15 }
  0x5c   : > { %v209_v18 = vmul.f32 0.125, %v208_v17 }
  0x5e   : > { %v210_v19 = vadd.f32 1e-05, %v209_v18 }
  0x60   : > { %455 = vrsqrt.f32 %v210_v19  ;;  %vm213_vm1 = vcmp.eq.f32.partialorder %v210_v19, inf  ;;  %v216_v21 = vand.u32 2147483648, %v210_v19  ;;  %vm215_vm2 = vcmp.eq.f32.partialorder %v210_v19, 0.0 }
  0x6a   : > { %v456_v20 = vpop.eup %455 }
  0x6b   : > { %v219_v22 = vmul.f32 %v456_v20, %v200_v9  ;;  %v212_v23 = vmul.f32 %v456_v20, %v210_v19 }
  0x6d   : > { %220 = vst.msk [vmem:[%s181_s30] sm:$0xff] %vm190_vm0, %v219_v22  ;;  %v214_v24 = vsel %vm213_vm1, %v210_v19, %v212_v23 }
  0x6e   : > { %v217_v25 = vsel %vm215_vm2, %v216_v21, %v214_v24 }
  0x6f   : > { %500 = shalt.err (!%p497_p6)
}
  0x70   : > { %s501_s21 = scalar_lea.hbm %s756_s19, 128  ;;  %s505_s15 = scalar_lea.hbm %s838_s1, 256 }
  0x71   : > { %p502_p4 = scmp.ne.s32.totalorder %s756_s19, %s501_s21  ;;  %p506_p1 = scmp.lt.u32.totalorder %s756_s19, %s838_s1 }
  0x72   : > { %p507_p2 = scmp.lt.u32.totalorder %s505_s15, %s501_s21  ;;  %p509_p8 = scmp.lt.u32.totalorder %s501_s21, %s756_s19 }
  0x73   : > { %p503_p10 = pnand %p502_p4, %p848_p9 }
  0x74   : > { %p508_p5 = por %p507_p2, %p506_p1 }
  0x75   : > { %p504_p12 = pneg %p503_p10 }
  0x76   : > { %p510_p11 = por %p509_p8, %p508_p5 }
  0x78   : > { %p511_p0 = pnand %p510_p11, %p504_p12 }
  0x7a   : > { %514 = shalt.err (!%p511_p0)
}
  0x7b   : > { %390 = dma.vmem_to_hbm [thread:$0]  (%p848_p9), %s750_s4, 128, %s756_s19, %s226_s26   ;;  %v222_v26 = vsel %vm221_vm3, %v741_v8, %v217_v25 }
  0x7c   : > { %224 = vst.msk [vmem:[%s747_s6] sm:$0x3] %vm223_vm4, %v222_v26  ;;  %s231_s20 = scalar_lea.sflag [#allocation7], %s732_s28  ;;  %s515_s25 = scalar_lea.vmem %s758_s8, 32 }
  0x7d   : > { %p516_p7 = scmp.ne.s32.totalorder %s758_s8, %s515_s25  ;;  %s605_s27 = smov [#allocation6]  }
  0x7e   : > { %s519_s29 = sshll.u32 %s605_s27, 4  ;;  %s520_s29 = int_to_ptr.vmem [resolvable:$false] %s519_s29 }
  0x7f   : > { %p517_p13 = pnand %p516_p7, %p848_p9  ;;  %s521_s3 = scalar_lea.vmem %s520_s29, 64 }
  0x80   : > { %p522_p6 = scmp.lt.s32.totalorder %s758_s8, %s520_s29  ;;  %p523_p4 = scmp.lt.s32.totalorder %s521_s3, %s515_s25 }
  0x81   : > { %p518_p3 = pneg %p517_p13 }
  0x82   : > { %p524_p10 = por %p523_p4, %p522_p6 }
  0x84   : > { %p525_p12 = pnand %p524_p10, %p518_p3 }
  0x86   : > { %528 = shalt.err (!%p525_p12)
}
  0x87   : > { %s529_s28 = scalar_lea.hbm %s764_s12, 32  ;;  %s533_s19 = scalar_lea.hbm %s839_s2, 64 }
  0x88   : > { %p530_p1 = scmp.ne.s32.totalorder %s764_s12, %s529_s28  ;;  %p534_p8 = scmp.lt.u32.totalorder %s764_s12, %s839_s2 }
  0x89   : > { %p535_p11 = scmp.lt.u32.totalorder %s533_s19, %s529_s28  ;;  %p537_p7 = scmp.lt.u32.totalorder %s529_s28, %s764_s12 }
  0x8a   : > { %p531_p2 = pnand %p530_p1, %p848_p9 }
  0x8b   : > { %p536_p0 = por %p535_p11, %p534_p8 }
  0x8c   : > { %p532_p5 = pneg %p531_p2 }
  0x8d   : > { %p538_p13 = por %p537_p7, %p536_p0 }
  0x8f   : > { %p539_p3 = pnand %p538_p13, %p532_p5 }
  0x91   : > { %542 = shalt.err (!%p539_p3)
}
  0x92   : > { %391 = dma.vmem_to_hbm [thread:$0]  (%p848_p9), %s758_s8, 32, %s764_s12, %s231_s20  }
  0x93 PF: > { %s271_s21 = sand.u32 1, %s581_s9   ;;  %p849_p6 = scmp.ne.s32.totalorder %s844_s24, 0 }
  0x94   : > { %p850_p4 = scmp.ge.s32.totalorder %s601_s14, 2  ;;  %s272_s30 = scalar_lea.sflag [#allocation4], %s271_s21 }
  0x96   : > { %p399_p10 = pnand %p850_p4, %p849_p6 }
  0x98   : > { %572 = dma.done.wait (!%p399_p10), %s272_s30, 128  }
  0x99   : > { %574 = vsyncadd (!%p399_p10), %s272_s30, 4294967168  ;;  %s281_s5 = scalar_lea.sflag [#allocation7], %s271_s21 }
  0x9a   : > { %576 = dma.done.wait (!%p399_p10), %s281_s5, 32  }
  0x9b   : > { %578 = vsyncadd (!%p399_p10), %s281_s5, 4294967264  ;;  %s22_s14 = sadd.s32 1, %s601_s14   ;;  %s851_s9 = smov %s585_s10 }
  0x9c   : > { %p19_p12 = scmp.ge.s32.totalorder %s22_s14, 4   ;;  %s852_s10 = smov %s589_s11 }
  0x9d   : > { %s853_s11 = smov %s677_s23  ;;  %s854_s12 = smov %s597_s13 }
  0x9e   : > { %s855_s13 = smov %s857_s17  ;;  %21 = sbr.rel (!%p19_p12) target bundleno = 8 (0x8), region = 86 }
  0xa5   :  { %286 = vsyncpa [#allocation3], 1 }
  0xa6   :  { %288 = vsyncpa [#allocation3 + $0x1], 1 }
  0xa7   :  { %289 = vsyncpa [#allocation4], 1 }
  0xa8   :  { %291 = vsyncpa [#allocation4 + $0x1], 1 }
  0xa9   :  { %292 = vsyncpa [#allocation7], 1 }
  0xaa   :  { %294 = vsyncpa [#allocation7 + $0x1], 1 }

</bundles_post_ra>
